<compile_context>
chip_gen: v6e
topology: v6e:2x2x1
jax: 0.10.0
libtpu: 0.0.40
codegen_flags: <defaults>
</compile_context>

<pallas_src>
import jax
import jax.numpy as jnp
from jax.experimental import pallas as pl
from jax.experimental.pallas import tpu as pltpu

# ----------------------------- model dims -----------------------------------
BS = 8          # batch size
VOCAB = 128     # vocab_size
EMB = 32        # embedding_size
HID = 32        # hidden_size
EXTRA_I = 16    # extra_inp_dim
EXTRA_H = 16    # extra_hid_dim
ALPHA = 0.7     # Boltzmann temperature (folded into output weights)
T = 8           # number of fused (teacher-forced) decode steps

# ---------------- packed f32 weight buffer layout (rows, 128 lanes) ----------
# every block starts at an 8-row-aligned offset and lives in lanes [0, width)
R_WEI_X = 0                       # (EMB, EMB)      extra_to_inp, emb rows
R_WEI_E = R_WEI_X + EMB           # (EXTRA_I, EMB)  extra_to_inp, extra rows
R_WEH_H = R_WEI_E + EXTRA_I       # (HID, HID)      extra_to_hid, hidden rows
R_WEH_E = R_WEH_H + HID           # (EXTRA_H, HID)  extra_to_hid, extra rows
R_WIH_R = R_WEH_E + EXTRA_H       # (EMB, HID)      GRU W_ir
R_WIH_Z = R_WIH_R + EMB           # (EMB, HID)      GRU W_iz
R_WIH_N = R_WIH_Z + EMB           # (EMB, HID)      GRU W_in
R_WHH_R = R_WIH_N + EMB           # (HID, HID)      GRU W_hr
R_WHH_Z = R_WHH_R + HID           # (HID, HID)      GRU W_hz
R_WHH_N = R_WHH_Z + HID           # (HID, HID)      GRU W_hn
R_BEI   = R_WHH_N + HID           # (BS, EMB)       bias extra_to_inp (broadcast)
R_BEH   = R_BEI + 8               # (BS, HID)       bias extra_to_hid
R_B_R   = R_BEH + 8               # (BS, HID)       b_ir + b_hr
R_B_Z   = R_B_R + 8               # (BS, HID)       b_iz + b_hz
R_B_IN  = R_B_Z + 8               # (BS, HID)       b_in
R_B_HN  = R_B_IN + 8              # (BS, HID)       b_hn
R_BOUT  = R_B_HN + 8              # (BS, VOCAB)     output bias / alpha
WPACK_ROWS = R_BOUT + 8           # = 344

# ---------------- packed bf16 buffer layout (rows, 128 lanes) ----------------
R_WOUT = 0                        # (HID, VOCAB)    output weight / alpha
R_EMB = R_WOUT + HID              # (VOCAB, EMB)    embedding table
BFPACK_ROWS = R_EMB + VOCAB       # = 160


# ------------------------------ kernel ---------------------------------------
def hred_decoder_kernel(
    ids_ref,       # SMEM (T*BS,) int32  -- scalar-prefetched token ids
    wpack_ref,     # VMEM (WPACK_ROWS, 128) f32, resident across all steps
    bfpack_ref,    # VMEM (BFPACK_ROWS, 128) bf16, resident
    ei_ref,        # VMEM (BS, EXTRA_I) f32, resident (extra_i[-1])
    eh_ref,        # VMEM (BS, EXTRA_H) f32, resident (extra_h[0])
    h0_ref,        # VMEM (BS, HID) f32, resident (initial hidden)
    logits_ref,    # OUT (1, BS, VOCAB) f32, block index = t  (lane-dense)
    hout_ref,      # OUT (BS, 128) f32, written once at the last step
    h_s,           # scratch VMEM (BS, HID)   hidden-state carry
    eip_s,         # scratch VMEM (BS, EMB)   extra_i @ wei_e + bei (constant)
    ehp_s,         # scratch VMEM (BS, HID)   extra_h @ weh_e + beh (constant)
):
    f32 = jnp.float32
    bf16 = jnp.bfloat16
    t = pl.program_id(0)

    @pl.when(t == 0)
    def _init():
        h_s[...] = h0_ref[...]
        eip_s[...] = (
            jnp.dot(ei_ref[...], wpack_ref[R_WEI_E:R_WEI_E + EXTRA_I, 0:EMB],
                    preferred_element_type=f32)
            + wpack_ref[R_BEI:R_BEI + BS, 0:EMB])
        ehp_s[...] = (
            jnp.dot(eh_ref[...], wpack_ref[R_WEH_E:R_WEH_E + EXTRA_H, 0:HID],
                    preferred_element_type=f32)
            + wpack_ref[R_BEH:R_BEH + BS, 0:HID])

    # ---- embedding lookup: build one-hot from SMEM scalar ids, bf16 matmul ----
    base = t * BS
    bcol = jax.lax.broadcasted_iota(jnp.int32, (BS, 1), 0)
    ids_col = jnp.zeros((BS, 1), jnp.int32)
    for b in range(BS):                      # 8 scalar SMEM reads + tiny selects
        ids_col = ids_col + jnp.where(bcol == b, ids_ref[base + b], 0)
    # NOTE: out-of-range ids produce a zero embedding (PyTorch would raise).
    onehot = (jax.lax.broadcasted_iota(jnp.int32, (BS, VOCAB), 1) == ids_col)
    emb = jnp.dot(onehot.astype(bf16),
                  bfpack_ref[R_EMB:R_EMB + VOCAB, 0:EMB],
                  preferred_element_type=f32)                      # (BS, EMB) f32

    # ---- x = tanh(extra_to_inp(cat([emb, extra_i]))) (extra term precomputed) --
    x_in = jnp.tanh(
        jnp.dot(emb, wpack_ref[R_WEI_X:R_WEI_X + EMB, 0:EMB],
                preferred_element_type=f32)
        + eip_s[...])

    # ---- decoder_hidden = tanh(extra_to_hid(cat([h_tm1, extra_h]))) ----------
    h_prev = h_s[...]
    dec_h = jnp.tanh(
        jnp.dot(h_prev, wpack_ref[R_WEH_H:R_WEH_H + HID, 0:HID],
                preferred_element_type=f32)
        + ehp_s[...])

    # ---- one GRU step (PyTorch gate order r,z,n), per-gate weights -----------
    def mm(x, r0, rows):
        return jnp.dot(x, wpack_ref[r0:r0 + rows, 0:HID],
                       preferred_element_type=f32)

    r = jax.nn.sigmoid(mm(x_in, R_WIH_R, EMB) + mm(dec_h, R_WHH_R, HID)
                       + wpack_ref[R_B_R:R_B_R + BS, 0:HID])
    z = jax.nn.sigmoid(mm(x_in, R_WIH_Z, EMB) + mm(dec_h, R_WHH_Z, HID)
                       + wpack_ref[R_B_Z:R_B_Z + BS, 0:HID])
    n = jnp.tanh(mm(x_in, R_WIH_N, EMB) + wpack_ref[R_B_IN:R_B_IN + BS, 0:HID]
                 + r * (mm(dec_h, R_WHH_N, HID)
                        + wpack_ref[R_B_HN:R_B_HN + BS, 0:HID]))
    h_t = (1.0 - z) * n + z * dec_h                                # (BS, HID)
    h_s[...] = h_t

    # ---- output projection (1/alpha already folded into W/b) -----------------
    logits = (jnp.dot(h_t.astype(bf16),
                      bfpack_ref[R_WOUT:R_WOUT + HID, 0:VOCAB],
                      preferred_element_type=f32)
              + wpack_ref[R_BOUT:R_BOUT + BS, 0:VOCAB])
    logits_ref[0] = logits

    @pl.when(t == pl.num_programs(0) - 1)
    def _finalize():
        hout_ref[...] = jnp.concatenate(
            [h_t, jnp.zeros((BS, 128 - HID), f32)], axis=1)


# ------------------------------ wrappers --------------------------------------
@jax.jit
def hred_decoder_decode(packed, ids_TB, h_tm1, extra_i, extra_h):
    """
    Fused T-step teacher-forced decode: equivalent to calling
    HREDDecoder.forward T times with the given tokens and carrying h_t.

    ids_TB  : (T, bs) int32
    h_tm1   : (1, bs, HID)
    extra_i : (1, bs, EXTRA_I)
    extra_h : (1, bs, EXTRA_H)
    returns (logits (T, bs, VOCAB), h_T (1, bs, HID))
    """
    nT, bs = ids_TB.shape
    assert bs == BS
    ids_flat = ids_TB.reshape(-1).astype(jnp.int32)

    grid_spec = pltpu.PrefetchScalarGridSpec(
        num_scalar_prefetch=1,
        grid=(nT,),
        in_specs=[
            pl.BlockSpec((WPACK_ROWS, 128), lambda t, ids: (0, 0)),   # weights f32
            pl.BlockSpec((BFPACK_ROWS, 128), lambda t, ids: (0, 0)),  # weights bf16
            pl.BlockSpec((BS, EXTRA_I), lambda t, ids: (0, 0)),       # extra_i[-1]
            pl.BlockSpec((BS, EXTRA_H), lambda t, ids: (0, 0)),       # extra_h[0]
            pl.BlockSpec((BS, HID), lambda t, ids: (0, 0)),           # h0
        ],
        out_specs=(
            pl.BlockSpec((1, BS, VOCAB), lambda t, ids: (t, 0, 0)),   # per-step logits
            pl.BlockSpec((BS, 128), lambda t, ids: (0, 0)),           # final hidden
        ),
        scratch_shapes=[
            pltpu.VMEM((BS, HID), jnp.float32),   # hidden carry
            pltpu.VMEM((BS, EMB), jnp.float32),   # extra_i projection (constant)
            pltpu.VMEM((BS, HID), jnp.float32),   # extra_h projection (constant)
        ],
    )
    logits, h_pad = pl.pallas_call(
        hred_decoder_kernel,
        out_shape=(jax.ShapeDtypeStruct((nT, BS, VOCAB), jnp.float32),
                   jax.ShapeDtypeStruct((BS, 128), jnp.float32)),
        grid_spec=grid_spec,
        # Time axis carries the recurrence -> must be "arbitrary".
        # TODO(synk): a batch-blocked leading "parallel" axis would occupy the
        # second v7x TensorCore once bs grows beyond a single tile.
        compiler_params=pltpu.CompilerParams(
            dimension_semantics=("arbitrary",)),
    )(ids_flat, packed["wpack"], packed["bfpack"],
      extra_i[-1], extra_h[0], h_tm1[0])
    return logits, h_pad[:, :HID][None]


def hred_decoder_forward(packed, x_ids, h_tm1, extra_i, extra_h):
    """Single-step entry point: exact HREDDecoder.forward semantics (gru, n_layers=1)."""
    logits, h_t = hred_decoder_decode(packed, x_ids[None, :], h_tm1, extra_i, extra_h)
    return logits[0], h_t, None


# ------------------------- parameters & packing --------------------------------
def init_raw_params(key):
    ks = jax.random.split(key, 12)
    s = 0.1
    return {
        "emb_tbl": s * jax.random.normal(ks[0], (VOCAB, EMB), jnp.float32),
        # extra_to_inp: Linear(EXTRA_I + EMB -> EMB); cat order is (emb, extra_i)
        "wei_x": s * jax.random.normal(ks[1], (EMB, EMB), jnp.float32),
        "wei_e": s * jax.random.normal(ks[2], (EXTRA_I, EMB), jnp.float32),
        "bei": s * jax.random.normal(ks[3], (1, EMB), jnp.float32),
        # extra_to_hid: Linear(EXTRA_H + HID -> HID); cat order is (h, extra_h)
        "weh_h": s * jax.random.normal(ks[4], (HID, HID), jnp.float32),
        "weh_e": s * jax.random.normal(ks[5], (EXTRA_H, HID), jnp.float32),
        "beh": s * jax.random.normal(ks[6], (1, HID), jnp.float32),
        # GRU weights, pre-transposed to x @ W form; gate order (r, z, n)
        # TODO(synk): PyTorch orthogonal-inits weight_hh; plain normal init used here.
        "wih": s * jax.random.normal(ks[7], (EMB, 3 * HID), jnp.float32),
        "bih": s * jax.random.normal(ks[8], (1, 3 * HID), jnp.float32),
        "whh": s * jax.random.normal(ks[9], (HID, 3 * HID), jnp.float32),
        "bhh": s * jax.random.normal(ks[10], (1, 3 * HID), jnp.float32),
        # output: Linear(HID -> VOCAB)
        "wout": s * jax.random.normal(ks[11], (HID, VOCAB), jnp.float32),
        "bout": jnp.zeros((1, VOCAB), jnp.float32),
    }


def pack_params(raw):
    """One-time packing of all weights/biases into two lane-padded buffers."""
    H = HID
    f32 = jnp.float32
    wih, whh, bih, bhh = raw["wih"], raw["whh"], raw["bih"], raw["bhh"]

    def put(buf, r0, x):
        rows, cols = x.shape
        return buf.at[r0:r0 + rows, 0:cols].set(x.astype(f32))

    def bcast(b):
        return jnp.broadcast_to(b, (BS, b.shape[-1]))

    wpack = jnp.zeros((WPACK_ROWS, 128), f32)
    wpack = put(wpack, R_WEI_X, raw["wei_x"])
    wpack = put(wpack, R_WEI_E, raw["wei_e"])
    wpack = put(wpack, R_WEH_H, raw["weh_h"])
    wpack = put(wpack, R_WEH_E, raw["weh_e"])
    wpack = put(wpack, R_WIH_R, wih[:, 0:H])
    wpack = put(wpack, R_WIH_Z, wih[:, H:2 * H])
    wpack = put(wpack, R_WIH_N, wih[:, 2 * H:3 * H])
    wpack = put(wpack, R_WHH_R, whh[:, 0:H])
    wpack = put(wpack, R_WHH_Z, whh[:, H:2 * H])
    wpack = put(wpack, R_WHH_N, whh[:, 2 * H:3 * H])
    wpack = put(wpack, R_BEI, bcast(raw["bei"]))
    wpack = put(wpack, R_BEH, bcast(raw["beh"]))
    wpack = put(wpack, R_B_R, bcast(bih[:, 0:H] + bhh[:, 0:H]))
    wpack = put(wpack, R_B_Z, bcast(bih[:, H:2 * H] + bhh[:, H:2 * H]))
    wpack = put(wpack, R_B_IN, bcast(bih[:, 2 * H:3 * H]))
    wpack = put(wpack, R_B_HN, bcast(bhh[:, 2 * H:3 * H]))
    wpack = put(wpack, R_BOUT, bcast(raw["bout"] / ALPHA))   # 1/alpha folded

    bfpack = jnp.zeros((BFPACK_ROWS, 128), jnp.bfloat16)
    bfpack = bfpack.at[R_WOUT:R_WOUT + HID, 0:VOCAB].set(
        (raw["wout"] / ALPHA).astype(jnp.bfloat16))          # 1/alpha folded
    bfpack = bfpack.at[R_EMB:R_EMB + VOCAB, 0:EMB].set(
        raw["emb_tbl"].astype(jnp.bfloat16))
    return {"wpack": wpack, "bfpack": bfpack}


# ------------------------------ pure-JAX reference ----------------------------
def reference_decode(raw, ids_TB, h0, extra_i_last, extra_h_0):
    """T-step teacher-forced loop over HREDDecoder.forward (mirrors kernel dtypes)."""
    H = HID
    emb_tbl = raw["emb_tbl"].astype(jnp.bfloat16)
    wout = (raw["wout"] / ALPHA).astype(jnp.bfloat16)
    bout = raw["bout"] / ALPHA
    eip = extra_i_last @ raw["wei_e"] + raw["bei"]
    ehp = extra_h_0 @ raw["weh_e"] + raw["beh"]
    h = h0
    logits_all = []
    for t in range(ids_TB.shape[0]):
        emb = emb_tbl[ids_TB[t]].astype(jnp.float32)
        x_in = jnp.tanh(emb @ raw["wei_x"] + eip)
        dec_h = jnp.tanh(h @ raw["weh_h"] + ehp)
        gi = x_in @ raw["wih"] + raw["bih"]
        gh = dec_h @ raw["whh"] + raw["bhh"]
        r = jax.nn.sigmoid(gi[:, :H] + gh[:, :H])
        z = jax.nn.sigmoid(gi[:, H:2 * H] + gh[:, H:2 * H])
        n = jnp.tanh(gi[:, 2 * H:] + r * gh[:, 2 * H:])
        h = (1.0 - z) * n + z * dec_h
        logits = jnp.dot(h.astype(jnp.bfloat16), wout,
                         preferred_element_type=jnp.float32) + bout
        logits_all.append(logits)
    return jnp.stack(logits_all), h


# ---------------------------------- main --------------------------------------
if __name__ == "__main__":
    key = jax.random.PRNGKey(0)
    kp, kx, kh, ki, ke = jax.random.split(key, 5)

    raw = init_raw_params(kp)
    packed = pack_params(raw)

    ids = jax.random.randint(kx, (T, BS), 0, VOCAB, dtype=jnp.int32)
    h_tm1 = jax.random.normal(kh, (1, BS, HID), jnp.float32)
    extra_i = jax.random.normal(ki, (1, BS, EXTRA_I), jnp.float32)
    extra_h = jax.random.normal(ke, (1, BS, EXTRA_H), jnp.float32)

    # fused T-step decode
    logits, h_T = hred_decoder_decode(packed, ids, h_tm1, extra_i, extra_h)
    jax.block_until_ready((logits, h_T))

    # single-step entry point (exact module forward, T=1)
    step_logits, step_h, _ = hred_decoder_forward(packed, ids[0], h_tm1, extra_i, extra_h)
    jax.block_until_ready((step_logits, step_h))

    # references
    ref_logits, ref_hT = reference_decode(raw, ids, h_tm1[0], extra_i[-1], extra_h[0])
    ref_l1, ref_h1 = reference_decode(raw, ids[:1], h_tm1[0], extra_i[-1], extra_h[0])

    assert logits.shape == (T, BS, VOCAB) and h_T.shape == (1, BS, HID)
    assert step_logits.shape == (BS, VOCAB) and step_h.shape == (1, BS, HID)
    assert jnp.allclose(logits, ref_logits, atol=1e-3, rtol=1e-3)
    assert jnp.allclose(h_T[0], ref_hT, atol=1e-3, rtol=1e-3)
    assert jnp.allclose(step_logits, ref_l1[0], atol=1e-3, rtol=1e-3)
    assert jnp.allclose(step_h[0], ref_h1, atol=1e-3, rtol=1e-3)

    print("KERNEL_OK")
</pallas_src>

<mosaic_0001>
module attributes {stable_mosaic.version = 11 : i64} {
  func.func @hred_decoder_kernel(%arg0: i32, %arg1: memref<64xi32, #tpu.memory_space<smem>>, %arg2: memref<344x128xf32, #tpu.memory_space<vmem>>, %arg3: memref<160x128xbf16, #tpu.memory_space<vmem>>, %arg4: memref<8x16xf32, #tpu.memory_space<vmem>>, %arg5: memref<8x16xf32, #tpu.memory_space<vmem>>, %arg6: memref<8x32xf32, #tpu.memory_space<vmem>>, %arg7: memref<1x8x128xf32, #tpu.memory_space<vmem>>, %arg8: memref<8x128xf32, #tpu.memory_space<vmem>>, %arg9: memref<8x32xf32, #tpu.memory_space<vmem>>, %arg10: memref<8x32xf32, #tpu.memory_space<vmem>>, %arg11: memref<8x32xf32, #tpu.memory_space<vmem>>) attributes {dimension_semantics = [#tpu.dimension_semantics<arbitrary>], iteration_bounds = array<i64: 8>, scalar_prefetch = 1 : i64, scratch_operands = 3 : i64, tpu.core_type = #tpu.core_type<tc>, window_params = [{pipeline_mode = #tpu.pipeline_mode<synchronous>, transform_indices = @transform_0, window_bounds = array<i64: 344, 128>}, {pipeline_mode = #tpu.pipeline_mode<synchronous>, transform_indices = @transform_1, window_bounds = array<i64: 160, 128>}, {pipeline_mode = #tpu.pipeline_mode<synchronous>, transform_indices = @transform_2, window_bounds = array<i64: 8, 16>}, {pipeline_mode = #tpu.pipeline_mode<synchronous>, transform_indices = @transform_3, window_bounds = array<i64: 8, 16>}, {pipeline_mode = #tpu.pipeline_mode<synchronous>, transform_indices = @transform_4, window_bounds = array<i64: 8, 32>}, {transform_indices = @transform_5, window_bounds = array<i64: 1, 8, 128>}, {pipeline_mode = #tpu.pipeline_mode<synchronous>, transform_indices = @transform_6, window_bounds = array<i64: 8, 128>}]} {
    %c0_i32 = arith.constant 0 : i32
    %0 = arith.cmpi eq, %arg0, %c0_i32 : i32
    %1 = arith.extui %0 : i1 to i32
    %c0_i32_0 = arith.constant 0 : i32
    %2 = arith.cmpi ne, %1, %c0_i32_0 : i32
    scf.if %2 {
      %c0_60 = arith.constant 0 : index
      %c0_61 = arith.constant 0 : index
      %149 = vector.load %arg6[%c0_60, %c0_61] : memref<8x32xf32, #tpu.memory_space<vmem>>, vector<8x32xf32>
      %c0_62 = arith.constant 0 : index
      %c0_63 = arith.constant 0 : index
      %150 = vector.load %arg9[%c0_62, %c0_63] : memref<8x32xf32, #tpu.memory_space<vmem>>, vector<8x32xf32>
      tpu.vector_store %arg9[%c0_62, %c0_63], %149 {strides = array<i32>} : memref<8x32xf32, #tpu.memory_space<vmem>>, vector<8x32xf32>,
      %c0_64 = arith.constant 0 : index
      %c0_65 = arith.constant 0 : index
      %151 = vector.load %arg4[%c0_64, %c0_65] : memref<8x16xf32, #tpu.memory_space<vmem>>, vector<8x16xf32>
      %c32_66 = arith.constant 32 : index
      %c0_67 = arith.constant 0 : index
      %152 = vector.load %arg2[%c32_66, %c0_67] : memref<344x128xf32, #tpu.memory_space<vmem>>, vector<16x32xf32>
      %cst_68 = arith.constant dense<0.000000e+00> : vector<8x32xf32>
      %153 = tpu.matmul %151, %152, %cst_68 {dimension_numbers = #tpu.dot_dimension_numbers<[1], [0], [0], [1], [0, 0, 1, 1], [], []>} : vector<8x16xf32>, vector<16x32xf32>, vector<8x32xf32> -> vector<8x32xf32>
      %c288 = arith.constant 288 : index
      %c0_69 = arith.constant 0 : index
      %154 = vector.load %arg2[%c288, %c0_69] : memref<344x128xf32, #tpu.memory_space<vmem>>, vector<8x32xf32>
      %155 = arith.addf %153, %154 : vector<8x32xf32>
      %c0_70 = arith.constant 0 : index
      %c0_71 = arith.constant 0 : index
      %156 = vector.load %arg10[%c0_70, %c0_71] : memref<8x32xf32, #tpu.memory_space<vmem>>, vector<8x32xf32>
      tpu.vector_store %arg10[%c0_70, %c0_71], %155 {strides = array<i32>} : memref<8x32xf32, #tpu.memory_space<vmem>>, vector<8x32xf32>,
      %c0_72 = arith.constant 0 : index
      %c0_73 = arith.constant 0 : index
      %157 = vector.load %arg5[%c0_72, %c0_73] : memref<8x16xf32, #tpu.memory_space<vmem>>, vector<8x16xf32>
      %c80 = arith.constant 80 : index
      %c0_74 = arith.constant 0 : index
      %158 = vector.load %arg2[%c80, %c0_74] : memref<344x128xf32, #tpu.memory_space<vmem>>, vector<16x32xf32>
      %cst_75 = arith.constant dense<0.000000e+00> : vector<8x32xf32>
      %159 = tpu.matmul %157, %158, %cst_75 {dimension_numbers = #tpu.dot_dimension_numbers<[1], [0], [0], [1], [0, 0, 1, 1], [], []>} : vector<8x16xf32>, vector<16x32xf32>, vector<8x32xf32> -> vector<8x32xf32>
      %c296 = arith.constant 296 : index
      %c0_76 = arith.constant 0 : index
      %160 = vector.load %arg2[%c296, %c0_76] : memref<344x128xf32, #tpu.memory_space<vmem>>, vector<8x32xf32>
      %161 = arith.addf %159, %160 : vector<8x32xf32>
      %c0_77 = arith.constant 0 : index
      %c0_78 = arith.constant 0 : index
      %162 = vector.load %arg11[%c0_77, %c0_78] : memref<8x32xf32, #tpu.memory_space<vmem>>, vector<8x32xf32>
      tpu.vector_store %arg11[%c0_77, %c0_78], %161 {strides = array<i32>} : memref<8x32xf32, #tpu.memory_space<vmem>>, vector<8x32xf32>,
    } else {
    }
    %c8_i32 = arith.constant 8 : i32
    %3 = arith.muli %arg0, %c8_i32 : i32
    %4 = tpu.iota {dimensions = array<i32: 0>} : vector<8x1xi32>
    %c0_i32_1 = arith.constant 0 : i32
    %5 = vector.broadcast %c0_i32_1 : i32 to vector<8x1xi32>
    %c0_i32_2 = arith.constant 0 : i32
    %6 = vector.broadcast %c0_i32_2 : i32 to vector<8x1xi32>
    %7 = arith.cmpi eq, %4, %6 : vector<8x1xi32>
    %c0_i32_3 = arith.constant 0 : i32
    %8 = arith.addi %3, %c0_i32_3 : i32
    %9 = arith.index_cast %8 : i32 to index
    %10 = memref.load %arg1[%9] : memref<64xi32, #tpu.memory_space<smem>>
    %c0_i32_4 = arith.constant 0 : i32
    %11 = vector.broadcast %10 : i32 to vector<8x1xi32>
    %12 = vector.broadcast %c0_i32_4 : i32 to vector<8x1xi32>
    %13 = arith.select %7, %11, %12 : vector<8x1xi1>, vector<8x1xi32>
    %14 = arith.addi %5, %13 : vector<8x1xi32>
    %c1_i32 = arith.constant 1 : i32
    %15 = vector.broadcast %c1_i32 : i32 to vector<8x1xi32>
    %16 = arith.cmpi eq, %4, %15 : vector<8x1xi32>
    %c1_i32_5 = arith.constant 1 : i32
    %17 = arith.addi %3, %c1_i32_5 : i32
    %18 = arith.index_cast %17 : i32 to index
    %19 = memref.load %arg1[%18] : memref<64xi32, #tpu.memory_space<smem>>
    %c0_i32_6 = arith.constant 0 : i32
    %20 = vector.broadcast %19 : i32 to vector<8x1xi32>
    %21 = vector.broadcast %c0_i32_6 : i32 to vector<8x1xi32>
    %22 = arith.select %16, %20, %21 : vector<8x1xi1>, vector<8x1xi32>
    %23 = arith.addi %14, %22 : vector<8x1xi32>
    %c2_i32 = arith.constant 2 : i32
    %24 = vector.broadcast %c2_i32 : i32 to vector<8x1xi32>
    %25 = arith.cmpi eq, %4, %24 : vector<8x1xi32>
    %c2_i32_7 = arith.constant 2 : i32
    %26 = arith.addi %3, %c2_i32_7 : i32
    %27 = arith.index_cast %26 : i32 to index
    %28 = memref.load %arg1[%27] : memref<64xi32, #tpu.memory_space<smem>>
    %c0_i32_8 = arith.constant 0 : i32
    %29 = vector.broadcast %28 : i32 to vector<8x1xi32>
    %30 = vector.broadcast %c0_i32_8 : i32 to vector<8x1xi32>
    %31 = arith.select %25, %29, %30 : vector<8x1xi1>, vector<8x1xi32>
    %32 = arith.addi %23, %31 : vector<8x1xi32>
    %c3_i32 = arith.constant 3 : i32
    %33 = vector.broadcast %c3_i32 : i32 to vector<8x1xi32>
    %34 = arith.cmpi eq, %4, %33 : vector<8x1xi32>
    %c3_i32_9 = arith.constant 3 : i32
    %35 = arith.addi %3, %c3_i32_9 : i32
    %36 = arith.index_cast %35 : i32 to index
    %37 = memref.load %arg1[%36] : memref<64xi32, #tpu.memory_space<smem>>
    %c0_i32_10 = arith.constant 0 : i32
    %38 = vector.broadcast %37 : i32 to vector<8x1xi32>
    %39 = vector.broadcast %c0_i32_10 : i32 to vector<8x1xi32>
    %40 = arith.select %34, %38, %39 : vector<8x1xi1>, vector<8x1xi32>
    %41 = arith.addi %32, %40 : vector<8x1xi32>
    %c4_i32 = arith.constant 4 : i32
    %42 = vector.broadcast %c4_i32 : i32 to vector<8x1xi32>
    %43 = arith.cmpi eq, %4, %42 : vector<8x1xi32>
    %c4_i32_11 = arith.constant 4 : i32
    %44 = arith.addi %3, %c4_i32_11 : i32
    %45 = arith.index_cast %44 : i32 to index
    %46 = memref.load %arg1[%45] : memref<64xi32, #tpu.memory_space<smem>>
    %c0_i32_12 = arith.constant 0 : i32
    %47 = vector.broadcast %46 : i32 to vector<8x1xi32>
    %48 = vector.broadcast %c0_i32_12 : i32 to vector<8x1xi32>
    %49 = arith.select %43, %47, %48 : vector<8x1xi1>, vector<8x1xi32>
    %50 = arith.addi %41, %49 : vector<8x1xi32>
    %c5_i32 = arith.constant 5 : i32
    %51 = vector.broadcast %c5_i32 : i32 to vector<8x1xi32>
    %52 = arith.cmpi eq, %4, %51 : vector<8x1xi32>
    %c5_i32_13 = arith.constant 5 : i32
    %53 = arith.addi %3, %c5_i32_13 : i32
    %54 = arith.index_cast %53 : i32 to index
    %55 = memref.load %arg1[%54] : memref<64xi32, #tpu.memory_space<smem>>
    %c0_i32_14 = arith.constant 0 : i32
    %56 = vector.broadcast %55 : i32 to vector<8x1xi32>
    %57 = vector.broadcast %c0_i32_14 : i32 to vector<8x1xi32>
    %58 = arith.select %52, %56, %57 : vector<8x1xi1>, vector<8x1xi32>
    %59 = arith.addi %50, %58 : vector<8x1xi32>
    %c6_i32 = arith.constant 6 : i32
    %60 = vector.broadcast %c6_i32 : i32 to vector<8x1xi32>
    %61 = arith.cmpi eq, %4, %60 : vector<8x1xi32>
    %c6_i32_15 = arith.constant 6 : i32
    %62 = arith.addi %3, %c6_i32_15 : i32
    %63 = arith.index_cast %62 : i32 to index
    %64 = memref.load %arg1[%63] : memref<64xi32, #tpu.memory_space<smem>>
    %c0_i32_16 = arith.constant 0 : i32
    %65 = vector.broadcast %64 : i32 to vector<8x1xi32>
    %66 = vector.broadcast %c0_i32_16 : i32 to vector<8x1xi32>
    %67 = arith.select %61, %65, %66 : vector<8x1xi1>, vector<8x1xi32>
    %68 = arith.addi %59, %67 : vector<8x1xi32>
    %c7_i32 = arith.constant 7 : i32
    %69 = vector.broadcast %c7_i32 : i32 to vector<8x1xi32>
    %70 = arith.cmpi eq, %4, %69 : vector<8x1xi32>
    %c7_i32_17 = arith.constant 7 : i32
    %71 = arith.addi %3, %c7_i32_17 : i32
    %72 = arith.index_cast %71 : i32 to index
    %73 = memref.load %arg1[%72] : memref<64xi32, #tpu.memory_space<smem>>
    %c0_i32_18 = arith.constant 0 : i32
    %74 = vector.broadcast %73 : i32 to vector<8x1xi32>
    %75 = vector.broadcast %c0_i32_18 : i32 to vector<8x1xi32>
    %76 = arith.select %70, %74, %75 : vector<8x1xi1>, vector<8x1xi32>
    %77 = arith.addi %68, %76 : vector<8x1xi32>
    %78 = tpu.iota {dimensions = array<i32: 1>} : vector<8x128xi32>
    %79 = vector.broadcast %77 : vector<8x1xi32> to vector<8x128xi32>
    %80 = arith.cmpi eq, %78, %79 : vector<8x128xi32>
    %81 = arith.extui %80 : vector<8x128xi1> to vector<8x128xi32>
    %82 = arith.sitofp %81 : vector<8x128xi32> to vector<8x128xf32>
    %83 = arith.truncf %82 : vector<8x128xf32> to vector<8x128xbf16>
    %c32 = arith.constant 32 : index
    %c0 = arith.constant 0 : index
    %84 = vector.load %arg3[%c32, %c0] : memref<160x128xbf16, #tpu.memory_space<vmem>>, vector<128x32xbf16>
    %cst = arith.constant dense<0.000000e+00> : vector<8x32xf32>
    %85 = tpu.matmul %83, %84, %cst {dimension_numbers = #tpu.dot_dimension_numbers<[1], [0], [0], [1], [0, 0, 1, 1], [], []>} : vector<8x128xbf16>, vector<128x32xbf16>, vector<8x32xf32> -> vector<8x32xf32>
    %c0_19 = arith.constant 0 : index
    %c0_20 = arith.constant 0 : index
    %86 = vector.load %arg2[%c0_19, %c0_20] : memref<344x128xf32, #tpu.memory_space<vmem>>, vector<32x32xf32>
    %cst_21 = arith.constant dense<0.000000e+00> : vector<8x32xf32>
    %87 = tpu.matmul %85, %86, %cst_21 {dimension_numbers = #tpu.dot_dimension_numbers<[1], [0], [0], [1], [0, 0, 1, 1], [], []>} : vector<8x32xf32>, vector<32x32xf32>, vector<8x32xf32> -> vector<8x32xf32>
    %c0_22 = arith.constant 0 : index
    %c0_23 = arith.constant 0 : index
    %88 = vector.load %arg10[%c0_22, %c0_23] : memref<8x32xf32, #tpu.memory_space<vmem>>, vector<8x32xf32>
    %89 = arith.addf %87, %88 : vector<8x32xf32>
    %90 = math.tanh %89 : vector<8x32xf32>
    %c0_24 = arith.constant 0 : index
    %c0_25 = arith.constant 0 : index
    %91 = vector.load %arg9[%c0_24, %c0_25] : memref<8x32xf32, #tpu.memory_space<vmem>>, vector<8x32xf32>
    %c48 = arith.constant 48 : index
    %c0_26 = arith.constant 0 : index
    %92 = vector.load %arg2[%c48, %c0_26] : memref<344x128xf32, #tpu.memory_space<vmem>>, vector<32x32xf32>
    %cst_27 = arith.constant dense<0.000000e+00> : vector<8x32xf32>
    %93 = tpu.matmul %91, %92, %cst_27 {dimension_numbers = #tpu.dot_dimension_numbers<[1], [0], [0], [1], [0, 0, 1, 1], [], []>} : vector<8x32xf32>, vector<32x32xf32>, vector<8x32xf32> -> vector<8x32xf32>
    %c0_28 = arith.constant 0 : index
    %c0_29 = arith.constant 0 : index
    %94 = vector.load %arg11[%c0_28, %c0_29] : memref<8x32xf32, #tpu.memory_space<vmem>>, vector<8x32xf32>
    %95 = arith.addf %93, %94 : vector<8x32xf32>
    %96 = math.tanh %95 : vector<8x32xf32>
    %c96 = arith.constant 96 : index
    %c0_30 = arith.constant 0 : index
    %97 = vector.load %arg2[%c96, %c0_30] : memref<344x128xf32, #tpu.memory_space<vmem>>, vector<32x32xf32>
    %cst_31 = arith.constant dense<0.000000e+00> : vector<8x32xf32>
    %98 = tpu.matmul %90, %97, %cst_31 {dimension_numbers = #tpu.dot_dimension_numbers<[1], [0], [0], [1], [0, 0, 1, 1], [], []>} : vector<8x32xf32>, vector<32x32xf32>, vector<8x32xf32> -> vector<8x32xf32>
    %c192 = arith.constant 192 : index
    %c0_32 = arith.constant 0 : index
    %99 = vector.load %arg2[%c192, %c0_32] : memref<344x128xf32, #tpu.memory_space<vmem>>, vector<32x32xf32>
    %cst_33 = arith.constant dense<0.000000e+00> : vector<8x32xf32>
    %100 = tpu.matmul %96, %99, %cst_33 {dimension_numbers = #tpu.dot_dimension_numbers<[1], [0], [0], [1], [0, 0, 1, 1], [], []>} : vector<8x32xf32>, vector<32x32xf32>, vector<8x32xf32> -> vector<8x32xf32>
    %101 = arith.addf %98, %100 : vector<8x32xf32>
    %c304 = arith.constant 304 : index
    %c0_34 = arith.constant 0 : index
    %102 = vector.load %arg2[%c304, %c0_34] : memref<344x128xf32, #tpu.memory_space<vmem>>, vector<8x32xf32>
    %103 = arith.addf %101, %102 : vector<8x32xf32>
    %104 = arith.negf %103 : vector<8x32xf32>
    %105 = math.exp %104 : vector<8x32xf32>
    %cst_35 = arith.constant 1.000000e+00 : f32
    %106 = vector.broadcast %cst_35 : f32 to vector<8x32xf32>
    %107 = arith.addf %106, %105 : vector<8x32xf32>
    %108 = arith.divf %106, %107 : vector<8x32xf32>
    %c128 = arith.constant 128 : index
    %c0_36 = arith.constant 0 : index
    %109 = vector.load %arg2[%c128, %c0_36] : memref<344x128xf32, #tpu.memory_space<vmem>>, vector<32x32xf32>
    %cst_37 = arith.constant dense<0.000000e+00> : vector<8x32xf32>
    %110 = tpu.matmul %90, %109, %cst_37 {dimension_numbers = #tpu.dot_dimension_numbers<[1], [0], [0], [1], [0, 0, 1, 1], [], []>} : vector<8x32xf32>, vector<32x32xf32>, vector<8x32xf32> -> vector<8x32xf32>
    %c224 = arith.constant 224 : index
    %c0_38 = arith.constant 0 : index
    %111 = vector.load %arg2[%c224, %c0_38] : memref<344x128xf32, #tpu.memory_space<vmem>>, vector<32x32xf32>
    %cst_39 = arith.constant dense<0.000000e+00> : vector<8x32xf32>
    %112 = tpu.matmul %96, %111, %cst_39 {dimension_numbers = #tpu.dot_dimension_numbers<[1], [0], [0], [1], [0, 0, 1, 1], [], []>} : vector<8x32xf32>, vector<32x32xf32>, vector<8x32xf32> -> vector<8x32xf32>
    %113 = arith.addf %110, %112 : vector<8x32xf32>
    %c312 = arith.constant 312 : index
    %c0_40 = arith.constant 0 : index
    %114 = vector.load %arg2[%c312, %c0_40] : memref<344x128xf32, #tpu.memory_space<vmem>>, vector<8x32xf32>
    %115 = arith.addf %113, %114 : vector<8x32xf32>
    %116 = arith.negf %115 : vector<8x32xf32>
    %117 = math.exp %116 : vector<8x32xf32>
    %cst_41 = arith.constant 1.000000e+00 : f32
    %118 = vector.broadcast %cst_41 : f32 to vector<8x32xf32>
    %119 = arith.addf %118, %117 : vector<8x32xf32>
    %120 = arith.divf %118, %119 : vector<8x32xf32>
    %c160 = arith.constant 160 : index
    %c0_42 = arith.constant 0 : index
    %121 = vector.load %arg2[%c160, %c0_42] : memref<344x128xf32, #tpu.memory_space<vmem>>, vector<32x32xf32>
    %cst_43 = arith.constant dense<0.000000e+00> : vector<8x32xf32>
    %122 = tpu.matmul %90, %121, %cst_43 {dimension_numbers = #tpu.dot_dimension_numbers<[1], [0], [0], [1], [0, 0, 1, 1], [], []>} : vector<8x32xf32>, vector<32x32xf32>, vector<8x32xf32> -> vector<8x32xf32>
    %c320 = arith.constant 320 : index
    %c0_44 = arith.constant 0 : index
    %123 = vector.load %arg2[%c320, %c0_44] : memref<344x128xf32, #tpu.memory_space<vmem>>, vector<8x32xf32>
    %124 = arith.addf %122, %123 : vector<8x32xf32>
    %c256 = arith.constant 256 : index
    %c0_45 = arith.constant 0 : index
    %125 = vector.load %arg2[%c256, %c0_45] : memref<344x128xf32, #tpu.memory_space<vmem>>, vector<32x32xf32>
    %cst_46 = arith.constant dense<0.000000e+00> : vector<8x32xf32>
    %126 = tpu.matmul %96, %125, %cst_46 {dimension_numbers = #tpu.dot_dimension_numbers<[1], [0], [0], [1], [0, 0, 1, 1], [], []>} : vector<8x32xf32>, vector<32x32xf32>, vector<8x32xf32> -> vector<8x32xf32>
    %c328 = arith.constant 328 : index
    %c0_47 = arith.constant 0 : index
    %127 = vector.load %arg2[%c328, %c0_47] : memref<344x128xf32, #tpu.memory_space<vmem>>, vector<8x32xf32>
    %128 = arith.addf %126, %127 : vector<8x32xf32>
    %129 = arith.mulf %108, %128 : vector<8x32xf32>
    %130 = arith.addf %124, %129 : vector<8x32xf32>
    %131 = math.tanh %130 : vector<8x32xf32>
    %cst_48 = arith.constant 1.000000e+00 : f32
    %132 = vector.broadcast %cst_48 : f32 to vector<8x32xf32>
    %133 = arith.subf %132, %120 : vector<8x32xf32>
    %134 = arith.mulf %133, %131 : vector<8x32xf32>
    %135 = arith.mulf %120, %96 : vector<8x32xf32>
    %136 = arith.addf %134, %135 : vector<8x32xf32>
    %c0_49 = arith.constant 0 : index
    %c0_50 = arith.constant 0 : index
    %137 = vector.load %arg9[%c0_49, %c0_50] : memref<8x32xf32, #tpu.memory_space<vmem>>, vector<8x32xf32>
    tpu.vector_store %arg9[%c0_49, %c0_50], %136 {strides = array<i32>} : memref<8x32xf32, #tpu.memory_space<vmem>>, vector<8x32xf32>,
    %138 = arith.truncf %136 : vector<8x32xf32> to vector<8x32xbf16>
    %c0_51 = arith.constant 0 : index
    %c0_52 = arith.constant 0 : index
    %139 = vector.load %arg3[%c0_51, %c0_52] : memref<160x128xbf16, #tpu.memory_space<vmem>>, vector<32x128xbf16>
    %cst_53 = arith.constant dense<0.000000e+00> : vector<8x128xf32>
    %140 = tpu.matmul %138, %139, %cst_53 {dimension_numbers = #tpu.dot_dimension_numbers<[1], [0], [0], [1], [0, 0, 1, 1], [], []>} : vector<8x32xbf16>, vector<32x128xbf16>, vector<8x128xf32> -> vector<8x128xf32>
    %c336 = arith.constant 336 : index
    %c0_54 = arith.constant 0 : index
    %141 = vector.load %arg2[%c336, %c0_54] : memref<344x128xf32, #tpu.memory_space<vmem>>, vector<8x128xf32>
    %142 = arith.addf %140, %141 : vector<8x128xf32>
    %c0_55 = arith.constant 0 : index
    %c0_56 = arith.constant 0 : index
    %c0_57 = arith.constant 0 : index
    %143 = vector.load %arg7[%c0_55, %c0_56, %c0_57] : memref<1x8x128xf32, #tpu.memory_space<vmem>>, vector<1x8x128xf32>
    %144 = vector.shape_cast %143 : vector<1x8x128xf32> to vector<8x128xf32>
    %145 = vector.shape_cast %142 : vector<8x128xf32> to vector<1x8x128xf32>
    tpu.vector_store %arg7[%c0_55, %c0_56, %c0_57], %145 {strides = array<i32>} : memref<1x8x128xf32, #tpu.memory_space<vmem>>, vector<1x8x128xf32>,
    %c7_i32_58 = arith.constant 7 : i32
    %146 = arith.cmpi eq, %arg0, %c7_i32_58 : i32
    %147 = arith.extui %146 : i1 to i32
    %c0_i32_59 = arith.constant 0 : i32
    %148 = arith.cmpi ne, %147, %c0_i32_59 : i32
    scf.if %148 {
      %cst_60 = arith.constant 0.000000e+00 : f32
      %149 = vector.broadcast %cst_60 : f32 to vector<8x96xf32>
      %150 = tpu.concatenate %136, %149 in 1 : vector<8x32xf32>, vector<8x96xf32> -> vector<8x128xf32>
      %c0_61 = arith.constant 0 : index
      %c0_62 = arith.constant 0 : index
      %151 = vector.load %arg8[%c0_61, %c0_62] : memref<8x128xf32, #tpu.memory_space<vmem>>, vector<8x128xf32>
      tpu.vector_store %arg8[%c0_61, %c0_62], %150 {strides = array<i32>} : memref<8x128xf32, #tpu.memory_space<vmem>>, vector<8x128xf32>,
    } else {
    }
    return
  }
  func.func @transform_0(%arg0: i32, %arg1: memref<64xi32, #tpu.memory_space<smem>>) -> (i32, i32) {
    %c0_i32 = arith.constant 0 : i32
    %c0_i32_0 = arith.constant 0 : i32
    %c0_i32_1 = arith.constant 0 : i32
    return %c0_i32, %c0_i32_0 : i32, i32
  }
  func.func @transform_1(%arg0: i32, %arg1: memref<64xi32, #tpu.memory_space<smem>>) -> (i32, i32) {
    %c0_i32 = arith.constant 0 : i32
    %c0_i32_0 = arith.constant 0 : i32
    %c0_i32_1 = arith.constant 0 : i32
    return %c0_i32, %c0_i32_0 : i32, i32
  }
  func.func @transform_2(%arg0: i32, %arg1: memref<64xi32, #tpu.memory_space<smem>>) -> (i32, i32) {
    %c0_i32 = arith.constant 0 : i32
    %c0_i32_0 = arith.constant 0 : i32
    %c0_i32_1 = arith.constant 0 : i32
    return %c0_i32, %c0_i32_0 : i32, i32
  }
  func.func @transform_3(%arg0: i32, %arg1: memref<64xi32, #tpu.memory_space<smem>>) -> (i32, i32) {
    %c0_i32 = arith.constant 0 : i32
    %c0_i32_0 = arith.constant 0 : i32
    %c0_i32_1 = arith.constant 0 : i32
    return %c0_i32, %c0_i32_0 : i32, i32
  }
  func.func @transform_4(%arg0: i32, %arg1: memref<64xi32, #tpu.memory_space<smem>>) -> (i32, i32) {
    %c0_i32 = arith.constant 0 : i32
    %c0_i32_0 = arith.constant 0 : i32
    %c0_i32_1 = arith.constant 0 : i32
    return %c0_i32, %c0_i32_0 : i32, i32
  }
  func.func @transform_5(%arg0: i32, %arg1: memref<64xi32, #tpu.memory_space<smem>>) -> (i32, i32, i32) {
    %c0_i32 = arith.constant 0 : i32
    %c0_i32_0 = arith.constant 0 : i32
    %c0_i32_1 = arith.constant 0 : i32
    return %arg0, %c0_i32, %c0_i32_0 : i32, i32, i32
  }
  func.func @transform_6(%arg0: i32, %arg1: memref<64xi32, #tpu.memory_space<smem>>) -> (i32, i32) {
    %c0_i32 = arith.constant 0 : i32
    %c0_i32_0 = arith.constant 0 : i32
    %c0_i32_1 = arith.constant 0 : i32
    return %c0_i32, %c0_i32_0 : i32, i32
  }
}

</mosaic_0001>

<bundles_post_ra>
// kernel: hred_decoder_decode.1
= control target key start
LH: loop header
LB: loop body
LE: loop exit
PB: predicated region body
PF: predicated region fallthrough
CT: control target
= control target key end

     0   :  { %s2319_s0 = inlined_call_operand.vmem [shape: s32[64], index: 0, kind: input, shape index: {}]   ;;  %s2320_s1 = inlined_call_operand.hbm [shape: f32[344,128], index: 1, kind: input, shape index: {}]   ;;  %s2321_s2 = inlined_call_operand.hbm [shape: bf16[160,128], index: 2, kind: input, shape index: {}]   ;;  %s2322_s3 = inlined_call_operand.vmem [shape: f32[8,16], index: 3, kind: input, shape index: {}]   ;;  %s2323_s4 = inlined_call_operand.hbm [shape: f32[8,16], index: 4, kind: input, shape index: {}]   ;;  %s2324_s5 = inlined_call_operand.hbm [shape: f32[8,32], index: 5, kind: input, shape index: {}]   ;;  %s2325_s6 = inlined_call_operand.hbm [shape: f32[8,8,128], index: 6, kind: output, shape index: {0}]   ;;  %s2326_s7 = inlined_call_operand.vmem [shape: f32[8,128], index: 7, kind: output, shape index: {1}]  }
   0x1   :  { %s13_s26 = sshll.u32 %s2319_s0, 4  ;;  %s14_s26 = int_to_ptr.vmem [resolvable:$true] %s13_s26 }
   0x2   :  { %s1773_s27 = scalar_lea.vmem %s14_s26, 16  ;;  %p1778_p1 = scmp.lt.s32.totalorder %s14_s26, %s14_s26 }
   0x3   :  { %p1774_p0 = scmp.ne.s32.totalorder %s14_s26, %s1773_s27  ;;  %p1779_p2 = scmp.lt.s32.totalorder %s1773_s27, %s1773_s27 }
   0x5   :  { %p1780_p3 = por %p1779_p2, %p1778_p1 }
   0x7   :  { %p1781_p4 = pnand %p1780_p3, %p1774_p0 }
   0x9   :  { %1784 = shalt.err (!%p1781_p4)  }
   0xa   :  { %s1965_s28 = smov [#allocation6]  }
   0xb   :  { %16 = dma.vmem_to_smem %s14_s26, 16, %s1965_s28, [#allocation5] }
   0xc   :  { %1931 = dma.done.wait [#allocation5], 16 }
   0xd   :  { %1932 = vsyncadd [#allocation5], 4294967280 }
   0xe   :  { %18 = sfence }
   0xf   :  { %19 = vsyncpa [#allocation8], 0 }
  0x10   :  { %20 = vsyncpa [#allocation11], 0 }
  0x11   :  { %21 = vsyncpa [#allocation14], 0 }
  0x12   :  { %22 = vsyncpa [#allocation9], 0 }
  0x13   :  { %24 = vsyncpa [#allocation9 + $0x1], 0  ;;  %s2023_s29 = smov 0   ;;  %s2025_s0 = smov 0  }
  0x14   :  { %s2027_s30 = smov 0   ;;  %s2029_s8 = smov 0  }
  0x15 LB: > { %s2044_s9 = sadd.s32 4294967295, %s1963_s8   ;;  %s1426_s10 = sadd.s32 4294967294, %s1963_s8   ;;  %s1963_s8 = sphi %s2029_s8, %s2347_s8   ;;  %s1959_s30 = sphi %s2027_s30, %s2346_s30   ;;  %s1955_s0 = sphi %s2025_s0, %s2345_s0   ;;  %s1951_s29 = sphi %s2023_s29, %s2344_s29  }
  0x16   : > { %s2048_s11 = sadd.s32 1, %s1963_s8   ;;  %s142_s12 = sadd.s32 1, %s1959_s30 }
  0x17   : > { %s139_s13 = ssub.s32 %s1963_s8, %s2048_s11  ;;  %p152_p5 = scmp.ne.s32.totalorder %s1959_s30, %s1955_s0 }
  0x18   : > { %p140_p6 = scmp.eq.s32.totalorder %s139_s13, 0  ;;  %p153_p7 = scmp.eq.s32.totalorder %s2044_s9, 7 }
  0x19   : > { %p158_p8 = scmp.ne.s32.totalorder %s1955_s0, %s1951_s29  ;;  %p159_p9 = scmp.eq.s32.totalorder %s1426_s10, 7 }
  0x1a   : > { %s2059_s14 = scalar_select %p140_p6, %s1959_s30, %s142_s12  }
  0x1b   : > { %p2061_p10 = por %p153_p7, %p152_p5  ;;  %p2065_p11 = por %p159_p9, %p158_p8 }
  0x1c   : > { %p1427_p12 = scmp.ge.s32.totalorder %s1963_s8, 1  ;;  %p187_p13 = scmp.lt.s32.totalorder %s1963_s8, 9 }
  0x1d   : > { %s2330_s15 = scalar_select %p2061_p10, 1, 0 }
  0x1e   : > { %s2331_s16 = scalar_select %p2065_p11, 1, 0 }
  0x1f   : > { %p2327_p1 = scmp.eq.s32.totalorder %s2044_s9, 0  ;;  %p2073_p2 = pnand %p1427_p12, %p187_p13 }
  0x20   : > { %s1966_s18 = smov [#allocation10]   ;;  %s1967_s21 = smov [#allocation7]  }
  0x21   : > { %s2332_s17 = scalar_select %p2073_p2, 1, 0 }
  0x22   : > { %s212_s19 = sshll.u32 %s1966_s18, 4  ;;  %p1677_p3 = pneg %p2073_p2  ;;  %s213_s19 = int_to_ptr.vmem [resolvable:$true] %s212_s19 }
  0x23   : > { %s199_s22 = sshll.u32 %s1967_s21, 4  ;;  %s1796_s23 = scalar_lea.vmem %s213_s19, 1280  ;;  %s200_s22 = int_to_ptr.vmem [resolvable:$true] %s199_s22 }
  0x24   : > { %p2081_p4 = pnand %p2327_p1, %p1677_p3  ;;  %p1797_p6 = scmp.ne.s32.totalorder %s213_s19, %s1796_s23 }
  0x25   : > { %p1804_p9 = scmp.lt.s32.totalorder %s213_s19, %s213_s19  ;;  %p1805_p12 = scmp.lt.s32.totalorder %s1796_s23, %s1796_s23 }
  0x26   : > { %p1787_p5 = pneg %p2081_p4 }
  0x27   : > { %p1806_p13 = por %p1805_p12, %p1804_p9 }
  0x28   : > { %p1799_p7 = pnand %p1797_p6, %p1787_p5 }
  0x2a   : > { %p1800_p8 = pneg %p1799_p7 }
  0x2c   : > { %p1807_p3 = pnand %p1806_p13, %p1800_p8 }
  0x2e   : > { %1810 = shalt.err (!%p1807_p3)
}
  0x2f   : > { %s1968_s24 = smov 64   ;;  %s1969_s25 = smov 4  }
  0x30   : > { %1683 = dma.hbm_to_vmem [thread:$0]  (!%p2081_p4), %s2321_s2, 1280, %s213_s19, [#allocation11], %s1968_s24, %s1968_s24, %s1969_s25  }
  0x31   : > { %s1822_s28 = scalar_lea.vmem %s200_s22, 5504  ;;  %p1830_p1 = scmp.lt.s32.totalorder %s200_s22, %s200_s22 }
  0x32   : > { %p1823_p0 = scmp.ne.s32.totalorder %s200_s22, %s1822_s28  ;;  %p1831_p11 = scmp.lt.s32.totalorder %s1822_s28, %s1822_s28 }
  0x34   : > { %p1825_p6 = pnand %p1823_p0, %p1787_p5  ;;  %p1832_p9 = por %p1831_p11, %p1830_p1 }
  0x36   : > { %p1826_p7 = pneg %p1825_p6 }
  0x38   : > { %p1833_p8 = pnand %p1832_p9, %p1826_p7 }
  0x3a   : > { %1836 = shalt.err (!%p1833_p8)
}
  0x3b   : > { %s1970_s10 = smov 128   ;;  %s1971_s12 = smov 8  }
  0x3c   : > { %1680 = dma.hbm_to_vmem [thread:$0]  (!%p2081_p4), %s2320_s1, 5504, %s200_s22, [#allocation8], %s1970_s10, %s1970_s10, %s1971_s12  }
  0x3d   : > { %s1972_s19 = smov [#allocation12]   ;;  %s1973_s23 = smov [#allocation13]  }
  0x3e   : > { %s229_s21 = sshll.u32 %s1972_s19, 4  ;;  %s240_s24 = sshll.u32 %s1973_s23, 4  ;;  %s230_s21 = int_to_ptr.vmem [resolvable:$true] %s229_s21  ;;  %s241_s24 = int_to_ptr.vmem [resolvable:$true] %s240_s24 }
  0x3f   : > { %s1848_s25 = scalar_lea.vmem %s230_s21, 128  ;;  %p1856_p12 = scmp.lt.s32.totalorder %s230_s21, %s230_s21 }
  0x40   : > { %p1849_p0 = scmp.ne.s32.totalorder %s230_s21, %s1848_s25  ;;  %p1857_p13 = scmp.lt.s32.totalorder %s1848_s25, %s1848_s25 }
  0x42   : > { %p1851_p11 = pnand %p1849_p0, %p1787_p5  ;;  %p1858_p3 = por %p1857_p13, %p1856_p12 }
  0x44   : > { %p1852_p1 = pneg %p1851_p11 }
  0x46   : > { %p1859_p6 = pnand %p1858_p3, %p1852_p1 }
  0x48   : > { %1862 = shalt.err (!%p1859_p6)
}
  0x49   : > { %1686 = dma.hbm_to_vmem [thread:$0]  (!%p2081_p4), %s2323_s4, 128, %s230_s21, [#allocation11]  }
  0x4a   : > { %s1874_s27 = scalar_lea.vmem %s241_s24, 128  ;;  %p1882_p0 = scmp.lt.s32.totalorder %s241_s24, %s241_s24 }
  0x4b   : > { %p1875_p7 = scmp.ne.s32.totalorder %s241_s24, %s1874_s27  ;;  %p1883_p11 = scmp.lt.s32.totalorder %s1874_s27, %s1874_s27 }
  0x4d   : > { %p1877_p9 = pnand %p1875_p7, %p1787_p5  ;;  %p1884_p10 = por %p1883_p11, %p1882_p0 }
  0x4f   : > { %p1878_p8 = pneg %p1877_p9 }
  0x51   : > { %p1885_p2 = pnand %p1884_p10, %p1878_p8 }
  0x53   : > { %1888 = shalt.err (!%p1885_p2)
}
  0x54   : > { %1689 = dma.hbm_to_vmem [thread:$0]  (!%p2081_p4), %s2324_s5, 128, %s241_s24, [#allocation14]  }
  0x55   : > { %p2334_p1 = scmp.ne.s32.totalorder %s2332_s17, 0 }
  0x56   : > { %p2335_p12 = scmp.eq.s32.totalorder (!%p2334_p1), %s2044_s9, 0 }
  0x57   : > { %253 = sbr.rel (%p2334_p1) target bundleno = 1239 (0x4d7), region = 40 }
  0x5c   : > { %1934 = dma.done.wait (%p2335_p12), [#allocation8], 5504   ;;  %p2336_p5 = pmov %p2335_p12 }
  0x5e   : > { %1936 = vsyncadd (%p2336_p5), [#allocation8], 4294961792  ;;  %p2337_p13 = pmov %p2336_p5 }
  0x5f   : > { %p2338_p10 = pmov %p2336_p5 }
  0x60   : > { %1938 = dma.done.wait (%p2337_p13), [#allocation11], 1408  }
  0x61   : > { %1940 = vsyncadd (%p2338_p10), [#allocation11], 4294965888  ;;  %p2339_p2 = pmov %p2336_p5 }
  0x63   : > { %1942 = dma.done.wait (%p2339_p2), [#allocation14], 128   ;;  %p2340_p4 = pmov %p2339_p2 }
  0x64   : > { %s285_s17 = sand.u32 1, %s1955_s0   ;;  %p2341_p3 = scmp.ne.s32.totalorder %s2044_s9, 0 }
  0x65   : > { %1944 = vsyncadd (%p2340_p4), [#allocation14], 4294967168  ;;  %s2136_s20 = sshll.u32 %s285_s17, 3 }
  0x66   : > { %s287_s12 = scalar_lea.vmem [#allocation15], %s2136_s20  ;;  %294 = sbr.rel (%p2341_p3) target bundleno = 309 (0x135), region = 60 }
  0x6b   : > { %v300_v0 = vld [vmem:[#allocation7 + $0x28] sm:$0xff]  ;;  %v379_v1 = vld [vmem:[#allocation7 + $0x58] sm:$0xff]  ;;  %v1974_v2 = vmov 0.0   ;;  %v299_v3 = vld [vmem:[#allocation7 + $0x20] sm:$0xff]  ;;  %vm296_vm0 = vcmask 261120   ;;  %vm302_vm1 = vcmask 130048  }
  0x6c   : > { %1529 = vmatprep.subr.mxu0 %v1974_v2  ;;  %1536 = vmatprep.subr.mxu1 %v1974_v2  ;;  %v378_v4 = vld [vmem:[#allocation7 + $0x50] sm:$0xff]  ;;  %v298_v6 = vld [vmem:[%s2322_s3] sm:$0xff]  ;;  %vm1975_vm2 = vmmov 0   ;;  %v301_v8 = vld [vmem:[#allocation7 + $0x120] sm:$0xff] }
  0x6d   : > { %1530 = vmatpush3.msra.mxu0 %v300_v0  ;;  %1537 = vmatpush3.msra.mxu1 %v379_v1  ;;  %v295_v5 = vld [vmem:[#allocation13] sm:$0xff]  ;;  %v377_v7 = vld [vmem:[#allocation12] sm:$0xff] }
  0x6e   : > { %1531 = vmatprep.subr.mxu0 %v1974_v2  ;;  %1538 = vmatprep.subr.mxu1 %v1974_v2  ;;  %297 = vst.msk [vmem:[#allocation2] sm:$0xff] %vm296_vm0, %v295_v5  ;;  %v380_v9 = vld [vmem:[#allocation7 + $0x128] sm:$0xff] }
  0x6f   : > { %1532 = vmatpush3.msra.mxu0 %v299_v3  ;;  %1533 = vmatprep.mubr.msk.f32.mxu0 %vm1975_vm2, %v1974_v2 }
  0x70   : > { %1539 = vmatpush3.msra.mxu1 %v378_v4  ;;  %1540 = vmatprep.mubr.msk.f32.mxu1 %vm1975_vm2, %v1974_v2 }
  0x71   : > { %1534 = vmatmul.mubr.msk.f32.vlgmr.msra.gmra.mxu0 %vm302_vm1, %v298_v6  ;;  %1541 = vmatmul.mubr.msk.f32.vlgmr.msra.gmra.mxu1 %vm302_vm1, %v377_v7 }
 0x131   : > { %v372_v10 = vpop.f32.mrf.mxu0  ;;  %v450_v11 = vpop.f32.mrf.mxu1 }
 0x132   : > { %v373_v12 = vadd.f32 %v372_v10, %v301_v8  ;;  %v451_v13 = vadd.f32 %v450_v11, %v380_v9 }
 0x133   : > { %v1535_v14 = vpop.f32.mrf.mxu0  ;;  %v1542_v15 = vpop.f32.mrf.mxu1 }
 0x134   : > { %376 = vst.msk [vmem:[#allocation3] sm:$0xff] %vm296_vm0, %v373_v12  ;;  %454 = vst.msk [vmem:[#allocation4] sm:$0xff] %vm296_vm0, %v451_v13 }
 0x135 PF: > { %v1749_v16 = vld [vmem:[#allocation10 + $0x48] sm:$0xff]   ;;  %v1976_v17 = vmov 0.0   ;;  %v1750_v18 = vld [vmem:[#allocation10 + $0x40] sm:$0xff]   ;;  %vm1977_vm3 = vmmov 0   ;;  %s2152_s19 = sshll.u32 %s2044_s9, 3  ;;  %v456_v19 = vlaneseq  ;;  %v1751_v20 = vld [vmem:[#allocation10 + $0x38] sm:$0xff]  }
 0x136   : > { %1543 = vmatprep.subr.bf16.mxu0 %v1976_v17  ;;  %1563 = vmatprep.subr.mxu1 %v1976_v17  ;;  %s459_s21 = sld [smem:[#allocation6 + %s2152_s19]]  ;;  %s463_s23 = sadd.s32 1, %s2152_s19  ;;  %v617_v22 = vld [vmem:[#allocation7 + $0x18] sm:$0xff]  ;;  %v1752_v23 = vld [vmem:[#allocation10 + $0x30] sm:$0xff]   ;;  %v616_v25 = vld [vmem:[#allocation7 + $0x10] sm:$0xff]  ;;  %vm619_vm14 = vcmask 261120  }
 0x137   : > { %1544 = vmatpush3.bf16.msra.mxu0 %v1749_v16  ;;  %1559 = vmatprep.mubr.msk.bf16.mxu0 %vm1977_vm3, %v1976_v17  ;;  %v2159_v21 = vshrl.u32 %v456_v19, 7  ;;  %s2163_s24 = sld [smem:[#allocation6 + %s463_s23]]  ;;  %s469_s25 = sadd.s32 2, %s2152_s19  ;;  %v615_v26 = vld [vmem:[#allocation7 + $0x8] sm:$0xff]  ;;  %v614_v28 = vld [vmem:[#allocation7] sm:$0xff]  ;;  %v1754_v38 = vld [vmem:[#allocation10 + $0x20] sm:$0xff]  }
 0x138   : > { %1545 = vmatprep.subr.bf16.mxu0 %v1976_v17  ;;  %1571 = vmatprep.mubr.msk.f32.mxu1 %vm1977_vm3, %v1976_v17  ;;  %s2166_s22 = sld [smem:[#allocation6 + %s469_s25]]  ;;  %s475_s26 = sadd.s32 3, %s2152_s19  ;;  %v1753_v29 = vld [vmem:[#allocation10 + $0x28] sm:$0xff]   ;;  %v1755_v45 = vld [vmem:[#allocation10 + $0x18] sm:$0xff]   ;;  %v1756_v51 = vld [vmem:[#allocation10 + $0x10] sm:$0xff]   ;;  %v505_v53 = vand.u32 127, %v456_v19 }
 0x139   : > { %vm458_vm4 = vcmp.eq.s32.totalorder %v2159_v21, 0  ;;  %vm462_vm5 = vcmp.eq.s32.totalorder %v2159_v21, 1  ;;  %s2171_s27 = sld [smem:[#allocation6 + %s475_s26]]  ;;  %s481_s28 = sadd.s32 4, %s2152_s19  ;;  %1564 = vmatpush3.msra.mxu1 %v617_v22  ;;  %vm468_vm6 = vcmp.eq.s32.totalorder %v2159_v21, 2  ;;  %vm474_vm7 = vcmp.eq.s32.totalorder %v2159_v21, 3 }
 0x13a   : > { %s2176_s10 = sld [smem:[#allocation6 + %s481_s28]]  ;;  %s487_s13 = sadd.s32 5, %s2152_s19  ;;  %1565 = vmatprep.subr.mxu1 %v1976_v17  ;;  %vm480_vm8 = vcmp.eq.s32.totalorder %v2159_v21, 4  ;;  %vm486_vm9 = vcmp.eq.s32.totalorder %v2159_v21, 5  ;;  %vm492_vm10 = vcmp.eq.s32.totalorder %v2159_v21, 6  ;;  %vm498_vm11 = vcmp.eq.s32.totalorder %v2159_v21, 7 }
 0x13b   : > { %1546 = vmatpush3.bf16.msra.mxu0 %v1750_v18  ;;  %s2180_s18 = sld [smem:[#allocation6 + %s487_s13]]  ;;  %1566 = vmatpush3.msra.mxu1 %v616_v25  ;;  %s499_s25 = sadd.s32 7, %s2152_s19  ;;  %v1978_v55 = vmov 1.0|1.0   ;;  %v698_v56 = vld [vmem:[#allocation7 + $0x48] sm:$0xff]  ;;  %v697_v58 = vld [vmem:[#allocation7 + $0x40] sm:$0xff] }
 0x13c   : > { %1547 = vmatprep.subr.bf16.mxu0 %v1976_v17  ;;  %v460_v24 = vstv %s459_s21  ;;  %s493_s21 = sadd.s32 6, %s2152_s19  ;;  %1567 = vmatprep.subr.mxu1 %v1976_v17  ;;  %s2191_s26 = sld [smem:[#allocation6 + %s499_s25]]  ;;  %v696_v60 = vld [vmem:[#allocation7 + $0x38] sm:$0xff]  ;;  %v695_v62 = vld [vmem:[#allocation7 + $0x30] sm:$0xff]  ;;  %v694_v0 = vld [vmem:[#allocation2] sm:$0xff] }
 0x13d   : > { %v461_v27 = vsel %vm458_vm4, %v460_v24, 0  ;;  %s2185_s23 = sld [smem:[#allocation6 + %s493_s21]]  ;;  %v465_v30 = vstv %s2163_s24  ;;  %1568 = vmatpush3.msra.mxu1 %v615_v26  ;;  %v1095_v1 = vld [vmem:[#allocation7 + $0xb8] sm:$0xff]  ;;  %v1094_v2 = vld [vmem:[#allocation7 + $0xb0] sm:$0xff]  ;;  %v1093_v4 = vld [vmem:[#allocation7 + $0xa8] sm:$0xff]  ;;  %p1466_p6 = scmp.ne.s32.totalorder %s2044_s9, 7 }
 0x13e   : > { %v466_v31 = vsel %vm462_vm5, %v465_v30, 0  ;;  %v471_v32 = vstv %s2166_s22  ;;  %1569 = vmatprep.subr.mxu1 %v1976_v17  ;;  %v781_v3 = vld [vmem:[#allocation7 + $0xd8] sm:$0xff]  ;;  %v1092_v5 = vld [vmem:[#allocation7 + $0xa0] sm:$0xff]  ;;  %v780_v6 = vld [vmem:[#allocation7 + $0xd0] sm:$0xff] }
 0x13f   : > { %1548 = vmatpush3.bf16.msra.mxu0 %v1751_v20  ;;  %v467_v33 = vadd.s32 %v466_v31, %v461_v27  ;;  %v472_v34 = vsel %vm468_vm6, %v471_v32, 0  ;;  %v477_v35 = vstv %s2171_s27  ;;  %1570 = vmatpush3.msra.mxu1 %v614_v28  ;;  %v779_v7 = vld [vmem:[#allocation7 + $0xc8] sm:$0xff]  ;;  %v778_v8 = vld [vmem:[#allocation7 + $0xc0] sm:$0xff]  ;;  %v618_v9 = vld [vmem:[#allocation3] sm:$0xff] }
 0x140   : > { %1549 = vmatprep.subr.bf16.mxu0 %v1976_v17  ;;  %v478_v36 = vsel %vm474_vm7, %v477_v35, 0  ;;  %v483_v37 = vstv %s2176_s10  ;;  %1574 = vmatprep.subr.mxu1 %v1976_v17  ;;  %v699_v13 = vld [vmem:[#allocation4] sm:$0xff]  ;;  %v776_v21 = vld [vmem:[#allocation7 + $0x70] sm:$0xff]  ;;  %v775_v22 = vld [vmem:[#allocation7 + $0x68] sm:$0xff] }
 0x141   : > { %v473_v39 = vadd.s32 %v472_v34, %v467_v33  ;;  %v489_v40 = vstv %s2180_s18  ;;  %v484_v41 = vsel %vm480_vm8, %v483_v37, 0  ;;  %v777_v19 = vld [vmem:[#allocation7 + $0x78] sm:$0xff]  ;;  %v942_v25 = vld [vmem:[#allocation7 + $0xf0] sm:$0xff]  ;;  %v941_v26 = vld [vmem:[#allocation7 + $0xe8] sm:$0xff] }
 0x142   : > { %v490_v44 = vsel %vm486_vm9, %v489_v40, 0  ;;  %v501_v47 = vstv %s2191_s26  ;;  %v943_v24 = vld [vmem:[#allocation7 + $0xf8] sm:$0xff]  ;;  %v940_v27 = vld [vmem:[#allocation7 + $0xe0] sm:$0xff]  ;;  %v937_v30 = vld [vmem:[#allocation7 + $0x88] sm:$0xff] }
 0x143   : > { %1550 = vmatpush3.bf16.msra.mxu0 %v1752_v23  ;;  %v479_v42 = vadd.s32 %v478_v36, %v473_v39  ;;  %v495_v43 = vstv %s2185_s23  ;;  %v502_v50 = vsel %vm498_vm11, %v501_v47, 0  ;;  %v774_v23 = vld [vmem:[#allocation7 + $0x60] sm:$0xff]  ;;  %v939_v28 = vld [vmem:[#allocation7 + $0x98] sm:$0xff]  ;;  %v1169_v33 = vld [vmem:[#allocation7 + $0x110] sm:$0xff] }
 0x144   : > { %1551 = vmatprep.subr.bf16.mxu0 %v1976_v17  ;;  %v496_v48 = vsel %vm492_vm10, %v495_v43, 0  ;;  %v936_v31 = vld [vmem:[#allocation7 + $0x80] sm:$0xff]  ;;  %v1170_v32 = vld [vmem:[#allocation7 + $0x118] sm:$0xff]  ;;  %v1168_v34 = vld [vmem:[#allocation7 + $0x108] sm:$0xff] }
 0x145   : > { %v485_v46 = vadd.s32 %v484_v41, %v479_v42  ;;  %v1167_v35 = vld [vmem:[#allocation7 + $0x100] sm:$0xff]  ;;  %v1758_v37 = vld [vmem:[#allocation10] sm:$0xff]   ;;  %v928_v43 = vld [vmem:[#allocation7 + $0x130] sm:$0xff] }
 0x146   : > { %v1757_v36 = vld [vmem:[#allocation10 + $0x8] sm:$0xff]  }
 0x147   : > { %1552 = vmatpush3.bf16.msra.mxu0 %v1753_v29  ;;  %v491_v49 = vadd.s32 %v490_v44, %v485_v46  ;;  %v938_v29 = vld [vmem:[#allocation7 + $0x90] sm:$0xff] }
 0x148   : > { %1553 = vmatprep.subr.bf16.mxu0 %v1976_v17 }
 0x149   : > { %v497_v52 = vadd.s32 %v496_v48, %v491_v49 }
 0x14b   : > { %1554 = vmatpush3.bf16.msra.mxu0 %v1754_v38  ;;  %v503_v54 = vadd.s32 %v502_v50, %v497_v52 }
 0x14c   : > { %1555 = vmatprep.subr.bf16.mxu0 %v1976_v17 }
 0x14d   : > { %vm506_vm12 = vcmp.eq.s32.totalorder %v505_v53, %v503_v54 }
 0x14e   : > { %vm1451_vm13 = vmpackc.low %vm506_vm12, %vm506_vm12 }
 0x14f   : > { %1556 = vmatpush3.bf16.msra.mxu0 %v1755_v45 }
 0x150   : > { %1557 = vmatprep.subr.bf16.mxu0 %v1976_v17 }
 0x153   : > { %1558 = vmatpush3.bf16.msra.mxu0 %v1756_v51  ;;  %v1084_v51 = vld [vmem:[#allocation7 + $0x138] sm:$0xff] }
 0x154   : > { %1629 = vmatprep.subr.mxu0 %v1976_v17 }
 0x156   : > { %1560 = vmatmul.mubr.msk.bf16.vlgmr.msra.gmra.mxu0 %vm1451_vm13, %v1978_v55 }
 0x157   : > { %1637 = vmatprep.mubr.msk.f32.mxu0 %vm1977_vm3, %v1976_v17  ;;  %1630 = vmatpush3.msra.mxu0 %v1095_v1 }
 0x158   : > { %1631 = vmatprep.subr.mxu0 %v1976_v17 }
 0x159   : > { %1632 = vmatpush3.msra.mxu0 %v1094_v2 }
 0x15a   : > { %1633 = vmatprep.subr.mxu0 %v1976_v17 }
 0x15b   : > { %1634 = vmatpush3.msra.mxu0 %v1093_v4 }
 0x15c   : > { %1635 = vmatprep.subr.mxu0 %v1976_v17 }
 0x15d   : > { %1636 = vmatpush3.msra.mxu0 %v1092_v5 }
 0x15e   : > { %1651 = vmatprep.subr.bf16.mxu0 %v1976_v17 }
 0x216   : > { %v608_v57 = vpop.f32.mrf.mxu0 }
 0x217   : > { %1572 = vmatmul.mubr.msk.f32.vlgmr.msra.gmra.mxu1 %vm619_vm14, %v608_v57 }
 0x218   : > { %1575 = vmatpush3.msra.mxu1 %v698_v56  ;;  %v1561_v59 = vpop.f32.mrf.mxu0  ;;  %1582 = vmatprep.mubr.msk.f32.mxu1 %vm1977_vm3, %v1976_v17 }
 0x219   : > { %1576 = vmatprep.subr.mxu1 %v1976_v17  ;;  %v1171_v59 = vld [vmem:[#allocation7 + $0x148] sm:$0xff] }
 0x21a   : > { %1577 = vmatpush3.msra.mxu1 %v697_v58  ;;  %v611_v61 = vpop.f32.mrf.mxu0 }
 0x21b   : > { %1578 = vmatprep.subr.mxu1 %v1976_v17 }
 0x21c   : > { %1579 = vmatpush3.msra.mxu1 %v696_v60  ;;  %v1562_v63 = vpop.f32.mrf.mxu0  ;;  %v1096_v60 = vld [vmem:[#allocation7 + $0x140] sm:$0xff] }
 0x21d   : > { %1580 = vmatprep.subr.mxu1 %v1976_v17 }
 0x21e   : > { %1581 = vmatpush3.msra.mxu1 %v695_v62 }
 0x21f   : > { %1583 = vmatmul.mubr.msk.f32.vlgmr.msra.gmra.mxu1 %vm619_vm14, %v694_v0  ;;  %1585 = vmatprep.subr.mxu1 %v1976_v17 }
 0x220   : > { %1593 = vmatprep.mubr.msk.f32.mxu1 %vm1977_vm3, %v1976_v17  ;;  %1586 = vmatpush3.msra.mxu1 %v781_v3 }
 0x221   : > { %1587 = vmatprep.subr.mxu1 %v1976_v17 }
 0x222   : > { %1588 = vmatpush3.msra.mxu1 %v780_v6 }
 0x223   : > { %1589 = vmatprep.subr.mxu1 %v1976_v17 }
 0x224   : > { %1590 = vmatpush3.msra.mxu1 %v779_v7 }
 0x225   : > { %1591 = vmatprep.subr.mxu1 %v1976_v17 }
 0x226   : > { %1592 = vmatpush3.msra.mxu1 %v778_v8 }
 0x227   : > { %1596 = vmatprep.subr.mxu1 %v1976_v17 }
 0x2d7   : > { %v689_v10 = vpop.f32.mrf.mxu1 }
 0x2d8   : > { %v690_v11 = vadd.f32 %v689_v10, %v618_v9 }
 0x2d9   : > { %v1573_v12 = vpop.f32.mrf.mxu1 }
 0x2da   : > { %1759 = vtanh.f32 %v690_v11  ;;  %v1255_v11 = vld [vmem:[#allocation7 + $0x150] sm:$0xff] }
 0x2df   : > { %v769_v14 = vpop.f32.mrf.mxu1 }
 0x2e0   : > { %v770_v15 = vadd.f32 %v769_v14, %v699_v13 }
 0x2e1   : > { %v1584_v16 = vpop.f32.mrf.mxu1 }
 0x2e2   : > { %1761 = vtanh.f32 %v770_v15 }
 0x2e7   : > { %v1760_v18 = vpop.eup %1759 }
 0x2e8   : > { %1638 = vmatmul.mubr.msk.f32.vlgmr.msra.gmra.mxu0 %vm619_vm14, %v1760_v18 }
 0x2e9   : > { %1655 = vmatprep.mubr.msk.bf16.mxu0 %vm1977_vm3, %v1976_v17  ;;  %1652 = vmatpush3.bf16.msra.mxu0 %v1757_v36 }
 0x2ea   : > { %1653 = vmatprep.subr.bf16.mxu0 %v1976_v17 }
 0x2ed   : > { %1654 = vmatpush3.bf16.msra.mxu0 %v1758_v37 }
 0x2ef   : > { %v2238_v20 = vpop.eup %1761 }
 0x2f0   : > { %1594 = vmatmul.mubr.msk.f32.vlgmr.msra.gmra.mxu1 %vm619_vm14, %v2238_v20 }
 0x2f1   : > { %1597 = vmatpush3.msra.mxu1 %v777_v19  ;;  %1604 = vmatprep.mubr.msk.f32.mxu1 %vm1977_vm3, %v1976_v17 }
 0x2f2   : > { %1598 = vmatprep.subr.mxu1 %v1976_v17 }
 0x2f3   : > { %1599 = vmatpush3.msra.mxu1 %v776_v21 }
 0x2f4   : > { %1600 = vmatprep.subr.mxu1 %v1976_v17 }
 0x2f5   : > { %1601 = vmatpush3.msra.mxu1 %v775_v22 }
 0x2f6   : > { %1602 = vmatprep.subr.mxu1 %v1976_v17 }
 0x2f7   : > { %1603 = vmatpush3.msra.mxu1 %v774_v23 }
 0x2f8   : > { %1605 = vmatmul.mubr.msk.f32.vlgmr.msra.gmra.mxu1 %vm619_vm14, %v1760_v18  ;;  %1607 = vmatprep.subr.mxu1 %v1976_v17 }
 0x2f9   : > { %1608 = vmatpush3.msra.mxu1 %v943_v24  ;;  %1615 = vmatprep.mubr.msk.f32.mxu1 %vm1977_vm3, %v1976_v17 }
 0x2fa   : > { %1609 = vmatprep.subr.mxu1 %v1976_v17 }
 0x2fb   : > { %1610 = vmatpush3.msra.mxu1 %v942_v25 }
 0x2fc   : > { %1611 = vmatprep.subr.mxu1 %v1976_v17 }
 0x2fd   : > { %1612 = vmatpush3.msra.mxu1 %v941_v26 }
 0x2fe   : > { %1613 = vmatprep.subr.mxu1 %v1976_v17 }
 0x2ff   : > { %1614 = vmatpush3.msra.mxu1 %v940_v27 }
 0x300   : > { %1616 = vmatmul.mubr.msk.f32.vlgmr.msra.gmra.mxu1 %vm619_vm14, %v2238_v20  ;;  %1618 = vmatprep.subr.mxu1 %v1976_v17 }
 0x301   : > { %1619 = vmatpush3.msra.mxu1 %v939_v28  ;;  %1626 = vmatprep.mubr.msk.f32.mxu1 %vm1977_vm3, %v1976_v17 }
 0x302   : > { %1620 = vmatprep.subr.mxu1 %v1976_v17 }
 0x303   : > { %1621 = vmatpush3.msra.mxu1 %v938_v29 }
 0x304   : > { %1622 = vmatprep.subr.mxu1 %v1976_v17 }
 0x305   : > { %1623 = vmatpush3.msra.mxu1 %v937_v30 }
 0x306   : > { %1624 = vmatprep.subr.mxu1 %v1976_v17 }
 0x307   : > { %1625 = vmatpush3.msra.mxu1 %v936_v31 }
 0x308   : > { %1627 = vmatmul.mubr.msk.f32.vlgmr.msra.gmra.mxu1 %vm619_vm14, %v1760_v18  ;;  %1640 = vmatprep.subr.mxu1 %v1976_v17 }
 0x309   : > { %1641 = vmatpush3.msra.mxu1 %v1170_v32  ;;  %1648 = vmatprep.mubr.msk.f32.mxu1 %vm1977_vm3, %v1976_v17 }
 0x30a   : > { %1642 = vmatprep.subr.mxu1 %v1976_v17 }
 0x30b   : > { %1643 = vmatpush3.msra.mxu1 %v1169_v33 }
 0x30c   : > { %1644 = vmatprep.subr.mxu1 %v1976_v17 }
 0x30d   : > { %1645 = vmatpush3.msra.mxu1 %v1168_v34 }
 0x30e   : > { %1646 = vmatprep.subr.mxu1 %v1976_v17 }
 0x30f   : > { %1647 = vmatpush3.msra.mxu1 %v1167_v35 }
 0x310   : > { %1649 = vmatmul.mubr.msk.f32.vlgmr.msra.gmra.mxu1 %vm619_vm14, %v2238_v20 }
 0x3a8   : > { %v1163_v38 = vpop.f32.mrf.mxu0 }
 0x3a9   : > { %v1164_v0 = vadd.f32 %v1163_v38, %v1096_v60 }
 0x3aa   : > { %v1639_v39 = vpop.f32.mrf.mxu0 }
 0x3b0   : > { %v851_v40 = vpop.f32.mrf.mxu1 }
 0x3b2   : > { %v1595_v41 = vpop.f32.mrf.mxu1 }
 0x3b8   : > { %v924_v42 = vpop.f32.mrf.mxu1 }
 0x3b9   : > { %v925_v44 = vadd.f32 %v924_v42, %v851_v40 }
 0x3ba   : > { %v1606_v45 = vpop.f32.mrf.mxu1 }
 0x3bb   : > { %v929_v46 = vadd.f32 %v928_v43, %v925_v44 }
 0x3bd   : > { %v1457_v47 = vmul.f32 -1.442695, %v929_v46 }
 0x3bf   : > { %1763 = vpow2.f32 %v1457_v47 }
 0x3c0   : > { %v1010_v48 = vpop.f32.mrf.mxu1 }
 0x3c2   : > { %v1617_v49 = vpop.f32.mrf.mxu1 }
 0x3c8   : > { %v1080_v50 = vpop.f32.mrf.mxu1 }
 0x3c9   : > { %v1081_v52 = vadd.f32 %v1080_v50, %v1010_v48 }
 0x3ca   : > { %v1628_v53 = vpop.f32.mrf.mxu1 }
 0x3cb   : > { %v1085_v54 = vadd.f32 %v1084_v51, %v1081_v52 }
 0x3cc   : > { %v1764_v17 = vpop.eup %1763 }
 0x3cd   : > { %v933_v55 = vadd.f32 1.0, %v1764_v17  ;;  %v1460_v56 = vmul.f32 -1.442695, %v1085_v54 }
 0x3cf   : > { %1765 = vrcp.f32 %v933_v55 }
 0x3d0   : > { %1767 = vpow2.f32 %v1460_v56  ;;  %v1238_v57 = vpop.f32.mrf.mxu1 }
 0x3d1   : > { %v1239_v61 = vadd.f32 %v1238_v57, %v1171_v59 }
 0x3d2   : > { %v1650_v58 = vpop.f32.mrf.mxu1 }
 0x3dc   : > { %v1766_v62 = vpop.eup %1765 }
 0x3dd   : > { %v1768_v63 = vpop.eup %1767  ;;  %v1242_v1 = vmul.f32 %v1766_v62, %v1239_v61 }
 0x3de   : > { %v1089_v2 = vadd.f32 1.0, %v1768_v63 }
 0x3df   : > { %v1243_v3 = vadd.f32 %v1242_v1, %v1164_v0 }
 0x3e0   : > { %1769 = vrcp.f32 %v1089_v2 }
 0x3e1   : > { %1771 = vtanh.f32 %v1243_v3 }
 0x3ed   : > { %v1770_v4 = vpop.eup %1769 }
 0x3ee   : > { %v1772_v5 = vpop.eup %1771  ;;  %v1245_v6 = vsub.f32 1.0, %v1770_v4  ;;  %v1247_v8 = vmul.f32 %v1770_v4, %v2238_v20 }
 0x3f0   : > { %v1246_v7 = vmul.f32 %v1772_v5, %v1245_v6 }
 0x3f2   : > { %v1248_v9 = vadd.f32 %v1247_v8, %v1246_v7 }
 0x3f4   : > { %1249 = vst.msk [vmem:[#allocation2] sm:$0xff] %vm619_vm14, %v1248_v9  ;;  %v1250_v10 = vpack.c.bf16 %v1248_v9, %v1248_v9 }
 0x3f6   : > { %1656 = vmatmul.mubr.msk.bf16.vlgmr.msra.gmra.mxu0 %vm619_vm14, %v1250_v10 }
 0x4b6   : > { %v1305_v12 = vpop.f32.mrf.mxu0 }
 0x4b7   : > { %v1306_v13 = vadd.f32 %v1305_v12, %v1255_v11 }
 0x4b8   : > { %v1657_v14 = vpop.f32.mrf.mxu0  ;;  %1315 = sbr.rel (%p1466_p6) target bundleno = 1215 (0x4bf), region = 64 }
 0x4b9   : > { %1311 = vst [vmem:[%s287_s12] sm:$0xff] %v1306_v13 }
 0x4ba   : > { %v1308_v15 = vpop.f32.mrf.mxu0 }
 0x4bc   : > { %v1658_v16 = vpop.f32.mrf.mxu0 }
 0x4bd   : > { %v1316_v18 = vsel %vm619_vm14, %v1248_v9, 0.0 }
 0x4be   : > { %1317 = vst [vmem:[%s2326_s7] sm:$0xff] %v1316_v18 }
 0x4bf PF: > { %s1468_s22 = sshll.u32 %s2044_s9, 7  ;;  %s1332_s13 = sshll.u32 %s287_s12, 4  ;;  %s1333_s13 = int_to_ptr.vmem [resolvable:$true] %s1332_s13 }
 0x4c0   : > { %s1330_s10 = scalar_lea.hbm %s2325_s6, %s1468_s22  ;;  %s1319_s18 = scalar_lea.sflag [#allocation9], %s285_s17 }
 0x4c1   : > { %s1889_s21 = scalar_lea.vmem %s1333_s13, 128  ;;  %p2342_p9 = scmp.ne.s32.totalorder %s2330_s15, 0 }
 0x4c2   : > { %p1890_p7 = scmp.ne.s32.totalorder %s1333_s13, %s1889_s21  ;;  %s1979_s23 = smov [#allocation15]  }
 0x4c3   : > { %s1893_s25 = sshll.u32 %s1979_s23, 4  ;;  %s1894_s25 = int_to_ptr.vmem [resolvable:$false] %s1893_s25 }
 0x4c4   : > { %p1891_p8 = pnand %p1890_p7, %p2342_p9  ;;  %s1895_s26 = scalar_lea.vmem %s1894_s25, 256 }
 0x4c5   : > { %p1896_p11 = scmp.lt.s32.totalorder %s1333_s13, %s1894_s25  ;;  %p1897_p1 = scmp.lt.s32.totalorder %s1895_s26, %s1889_s21 }
 0x4c6   : > { %p1892_p0 = pneg %p1891_p8 }
 0x4c7   : > { %p1898_p12 = por %p1897_p1, %p1896_p11 }
 0x4c9   : > { %p1899_p5 = pnand %p1898_p12, %p1892_p0 }
 0x4cb   : > { %1902 = shalt.err (!%p1899_p5)
}
 0x4cc   : > { %s1903_s9 = scalar_lea.hbm %s1330_s10, 128  ;;  %s1907_s12 = scalar_lea.hbm %s2325_s6, 1024 }
 0x4cd   : > { %p1904_p13 = scmp.ne.s32.totalorder %s1330_s10, %s1903_s9  ;;  %p1908_p4 = scmp.lt.s32.totalorder %s1330_s10, %s2325_s6 }
 0x4ce   : > { %p1909_p3 = scmp.lt.s32.totalorder %s1907_s12, %s1903_s9 }
 0x4cf   : > { %p1905_p10 = pnand %p1904_p13, %p2342_p9 }
 0x4d0   : > { %p1910_p6 = por %p1909_p3, %p1908_p4 }
 0x4d1   : > { %p1906_p2 = pneg %p1905_p10 }
 0x4d3   : > { %p1911_p7 = pnand %p1910_p6, %p1906_p2 }
 0x4d5   : > { %1914 = shalt.err (!%p1911_p7)
}
 0x4d6   : > { %1675 = dma.vmem_to_hbm [thread:$0]  (%p2342_p9), %s1333_s13, 128, %s1330_s10, %s1319_s18  }
 0x4d7 PF: > { %p1702_p8 = scmp.ge.s32.totalorder %s1963_s8, 2  ;;  %s1350_s22 = sand.u32 1, %s1951_s29  }
 0x4d8   : > { %p2343_p0 = scmp.ne.s32.totalorder %s2331_s16, 0  ;;  %s1351_s27 = scalar_lea.sflag [#allocation9], %s1350_s22 }
 0x4da   : > { %p1691_p11 = pnand %p1702_p8, %p2343_p0 }
 0x4dc   : > { %p1692_p1 = pneg %p1691_p11 }
 0x4de   : > { %1946 = dma.done.wait (%p1692_p1), %s1351_s27, 128  }
 0x4df   : > { %1948 = vsyncadd (%p1692_p1), %s1351_s27, 4294967168  ;;  %p27_p12 = scmp.ge.s32.totalorder %s2048_s11, 10   ;;  %s2344_s29 = smov %s1955_s0 }
 0x4e0   : > { %s2345_s0 = smov %s1959_s30  ;;  %s2346_s30 = smov %s2059_s14 }
 0x4e1   : > { %s2347_s8 = smov %s2048_s11  ;;  %29 = sbr.rel (!%p27_p12) target bundleno = 21 (0x15), region = 105 }
 0x4e6   :  { %1356 = vsyncpa [#allocation8], 1 }
 0x4e7   :  { %1358 = vsyncpa [#allocation8 + $0x1], 1 }
 0x4e8   :  { %1359 = vsyncpa [#allocation11], 1 }
 0x4e9   :  { %1360 = vsyncpa [#allocation14], 1 }
 0x4ea   :  { %1361 = vsyncpa [#allocation9], 1 }
 0x4eb   :  { %1363 = vsyncpa [#allocation9 + $0x1], 1 }

</bundles_post_ra>
